<compile_context>
chip_gen: v5e
topology: v5e:2x2
jax: 0.10.0
libtpu: 0.0.40
codegen_flags: <defaults>
</compile_context>

<pallas_src>
import functools

import jax
import jax.numpy as jnp
from jax.experimental import pallas as pl
from jax.experimental.pallas import tpu as pltpu


# ---------------------------------------------------------------------------
# Kernels
# ---------------------------------------------------------------------------
def _convt_add_kernel(x_ref, w_ref, b_ref, x2_ref, o_ref):
    """Fused ConvTranspose2d(k=2, s=2) + 2x2 interleave + skip add.

    x_ref : (1, TH*W, C)         low-res pixels (sublanes) x in-channels (lanes)
    w_ref : (2, C, 2*Co)         w_ref[ki][c, kj*Co + o] = W[c, o, ki, kj]
    b_ref : (1, 2*Co)            bias tiled over kj
    x2_ref: (1, TH, 2, W, 2*Co)  skip connection (same layout as o_ref)
    o_ref : (1, TH, 2, W, 2*Co)  out[h, ki, w, kj*Co+o] == NHWC out[2h+ki, 2w+kj, o]
    """
    th = o_ref.shape[1]
    w = o_ref.shape[3]
    c2o = o_ref.shape[4]

    x = x_ref[0]       # (TH*W, C)
    b = b_ref[...]     # (1, 2*Co)  -- loaded once, broadcast over pixels

    for ki in range(2):  # unrolled: two MXU passes, two dense stores
        y = jnp.dot(x, w_ref[ki], preferred_element_type=jnp.float32) + b
        # (TH*W, 2*Co) -> (TH, W, 2*Co): pure sublane regrouping (W % 8 == 0);
        # the lane axis (kj, o) is untouched.
        y = y.reshape(th, w, c2o)
        o_ref[0, :, ki, :, :] = (x2_ref[0, :, ki, :, :] + y).astype(o_ref.dtype)


def _convt_kernel(x_ref, w_ref, b_ref, o_ref):
    """ConvTranspose2d(k=2, s=2) + 2x2 interleave, no skip (rare pad/crop path)."""
    th = o_ref.shape[1]
    w = o_ref.shape[3]
    c2o = o_ref.shape[4]
    x = x_ref[0]
    b = b_ref[...]
    for ki in range(2):
        y = jnp.dot(x, w_ref[ki], preferred_element_type=jnp.float32) + b
        o_ref[0, :, ki, :, :] = y.reshape(th, w, c2o).astype(o_ref.dtype)


# ---------------------------------------------------------------------------
# Wrapper
# ---------------------------------------------------------------------------
def _pick_tile_rows(H, W, C, Co, requested=None):
    """Rows of the low-res image per grid step.

    Budget ~2 MiB of f32 per block set (x1 + x2 + out tiles) so double
    buffering stays far below the v7x scoped-VMEM limit.  TH must divide H and
    TH*W must be a multiple of 8 (sublane rule) unless TH == H (full extent).
    """
    if requested is not None:
        th = int(requested)
    else:
        budget = 2 * 1024 * 1024
        per_row = 4 * (W * C + 2 * (4 * W * Co))  # x1 row + (x2 + out) rows
        th = max(1, budget // per_row)
    th = max(1, min(int(th), H))
    while th > 1 and (H % th != 0 or (th * W) % 8 != 0):
        th -= 1
    if (th * W) % 8 != 0 and th != H:
        th = H
    return th


def _compiler_params():
    return pltpu.CompilerParams(
        dimension_semantics=("parallel", "parallel"),
        vmem_limit_bytes=32 * 1024 * 1024,
    )


@functools.partial(jax.jit, static_argnames=("tile_rows",))
def up_forward(x1_nchw, x2_nchw, weight, bias, tile_rows=None):
    """Forward pass of `up` (PyTorch NCHW interface).

    x1_nchw: (N, C, H, W)        tensor to be upsampled 2x
    x2_nchw: (N, C//2, H2, W2)   skip connection (defines output spatial size)
    weight : (C, C//2, 2, 2)     ConvTranspose2d weight (PyTorch layout)
    bias   : (C//2,)
    returns: (N, C//2, H2, W2)
    """
    N, C, H, W = x1_nchw.shape
    Co = weight.shape[1]
    _, _, H2, W2 = x2_nchw.shape
    diffY = H2 - 2 * H
    diffX = W2 - 2 * W

    th = _pick_tile_rows(H, W, C, Co, tile_rows)
    grid = (N, H // th)

    # NCHW -> NHWC at the module boundary (disappears if the model is NHWC).
    x1 = jnp.transpose(x1_nchw, (0, 2, 3, 1)).reshape(N, H * W, C)
    x2_nhwc = jnp.transpose(x2_nchw, (0, 2, 3, 1))

    # weight (c, o, ki, kj) -> wk[ki, c, kj*Co + o];  bias -> bk[0, kj*Co + o].
    wk = jnp.transpose(weight, (2, 0, 3, 1)).reshape(2, C, 2 * Co)
    bk = jnp.tile(bias, 2).reshape(1, 2 * Co)

    x1_spec = pl.BlockSpec((1, th * W, C), lambda n, h: (n, h, 0))
    w_spec = pl.BlockSpec((2, C, 2 * Co), lambda n, h: (0, 0, 0))
    b_spec = pl.BlockSpec((1, 2 * Co), lambda n, h: (0, 0))
    y_spec = pl.BlockSpec((1, th, 2, W, 2 * Co), lambda n, h: (n, h, 0, 0, 0))
    out_shape = jax.ShapeDtypeStruct((N, H, 2, W, 2 * Co), x2_nchw.dtype)

    if diffY == 0 and diffX == 0:
        # Common UNet case: fully fused single kernel (matmul + interleave + add).
        x2r = x2_nhwc.reshape(N, H, 2, W, 2 * Co)  # free reshape
        out5 = pl.pallas_call(
            _convt_add_kernel,
            out_shape=out_shape,
            grid=grid,
            in_specs=[x1_spec, w_spec, b_spec, y_spec],
            out_specs=y_spec,
            compiler_params=_compiler_params(),
        )(x1, wk, bk, x2r)
        out_nhwc = out5.reshape(N, H2, W2, Co)     # free reshape
    else:
        # Rare pad/crop case: same upsample kernel, then a boundary-only
        # pad/crop and the skip add in plain XLA.
        up5 = pl.pallas_call(
            _convt_kernel,
            out_shape=out_shape,
            grid=grid,
            in_specs=[x1_spec, w_spec, b_spec],
            out_specs=y_spec,
            compiler_params=_compiler_params(),
        )(x1, wk, bk)
        up_nhwc = up5.reshape(N, 2 * H, 2 * W, Co)
        up_nhwc = jax.lax.pad(
            up_nhwc, jnp.array(0.0, up_nhwc.dtype),
            ((0, 0, 0),
             (diffY // 2, diffY - diffY // 2, 0),
             (diffX // 2, diffX - diffX // 2, 0),
             (0, 0, 0)))
        out_nhwc = x2_nhwc + up_nhwc

    # NHWC -> NCHW for the PyTorch-like interface.
    return jnp.transpose(out_nhwc, (0, 3, 1, 2))


# ---------------------------------------------------------------------------
# Pure-JAX reference (for a numerical self-check)
# ---------------------------------------------------------------------------
def up_reference(x1, x2, weight, bias):
    N, C, H, W = x1.shape
    Co = weight.shape[1]
    y = jnp.einsum("nchw,coab->nohawb", x1, weight)
    y = y.reshape(N, Co, 2 * H, 2 * W) + bias.reshape(1, Co, 1, 1)
    H2, W2 = x2.shape[2], x2.shape[3]
    dY, dX = H2 - 2 * H, W2 - 2 * W
    y = jax.lax.pad(
        y, jnp.array(0.0, y.dtype),
        ((0, 0, 0), (0, 0, 0),
         (dY // 2, dY - dY // 2, 0), (dX // 2, dX - dX // 2, 0)))
    return x2 + y


if __name__ == "__main__":
    key = jax.random.PRNGKey(0)
    k1, k2, k3, k4, k5 = jax.random.split(key, 5)

    N, in_ch, H, W = 2, 4, 16, 16
    out_ch = in_ch // 2

    x1 = jax.random.normal(k1, (N, in_ch, H, W), dtype=jnp.float32)
    weight = 0.1 * jax.random.normal(k3, (in_ch, out_ch, 2, 2), dtype=jnp.float32)
    bias = 0.1 * jax.random.normal(k4, (out_ch,), dtype=jnp.float32)

    # Case 1: x2 spatial == 2x upsample (diff = 0) -> fully fused kernel path.
    # tile_rows=4 exercises the spatial tiling: grid = (2, 4) = 8 steps.
    x2 = jax.random.normal(k2, (N, out_ch, 2 * H, 2 * W), dtype=jnp.float32)
    out = up_forward(x1, x2, weight, bias, tile_rows=4)
    jax.block_until_ready(out)
    ref = up_reference(x1, x2, weight, bias)
    assert out.shape == ref.shape
    err = float(jnp.max(jnp.abs(out - ref)))
    assert err < 2e-2, f"fused path mismatch: max abs err {err}"

    # Case 2: x2 slightly larger (F.pad path in the original module).
    x2b = jax.random.normal(k5, (N, out_ch, 2 * H + 2, 2 * W + 2), dtype=jnp.float32)
    outb = up_forward(x1, x2b, weight, bias)
    jax.block_until_ready(outb)
    refb = up_reference(x1, x2b, weight, bias)
    errb = float(jnp.max(jnp.abs(outb - refb)))
    assert errb < 2e-2, f"pad path mismatch: max abs err {errb}"

    print("KERNEL_OK")
</pallas_src>

<mosaic_0001>
module attributes {stable_mosaic.version = 11 : i64} {
  func.func @_convt_add_kernel(%arg0: i32, %arg1: i32, %arg2: memref<1x64x4xf32, #tpu.memory_space<vmem>>, %arg3: memref<2x4x4xf32, #tpu.memory_space<vmem>>, %arg4: memref<1x4xf32, #tpu.memory_space<vmem>>, %arg5: memref<1x4x2x16x4xf32, #tpu.memory_space<vmem>>, %arg6: memref<1x4x2x16x4xf32, #tpu.memory_space<vmem>>) attributes {dimension_semantics = [#tpu.dimension_semantics<parallel>, #tpu.dimension_semantics<parallel>], iteration_bounds = array<i64: 2, 4>, scalar_prefetch = 0 : i64, scratch_operands = 0 : i64, tpu.core_type = #tpu.core_type<tc>, window_params = [{transform_indices = @transform_0, window_bounds = array<i64: 1, 64, 4>}, {pipeline_mode = #tpu.pipeline_mode<synchronous>, transform_indices = @transform_1, window_bounds = array<i64: 2, 4, 4>}, {pipeline_mode = #tpu.pipeline_mode<synchronous>, transform_indices = @transform_2, window_bounds = array<i64: 1, 4>}, {transform_indices = @transform_3, window_bounds = array<i64: 1, 4, 2, 16, 4>}, {transform_indices = @transform_4, window_bounds = array<i64: 1, 4, 2, 16, 4>}]} {
    %c0 = arith.constant 0 : index
    %c0_0 = arith.constant 0 : index
    %c0_1 = arith.constant 0 : index
    %0 = vector.load %arg2[%c0, %c0_0, %c0_1] : memref<1x64x4xf32, #tpu.memory_space<vmem>>, vector<1x64x4xf32>
    %1 = vector.shape_cast %0 : vector<1x64x4xf32> to vector<64x4xf32>
    %c0_2 = arith.constant 0 : index
    %c0_3 = arith.constant 0 : index
    %2 = vector.load %arg4[%c0_2, %c0_3] : memref<1x4xf32, #tpu.memory_space<vmem>>, vector<1x4xf32>
    %c0_4 = arith.constant 0 : index
    %c0_5 = arith.constant 0 : index
    %c0_6 = arith.constant 0 : index
    %3 = vector.load %arg3[%c0_4, %c0_5, %c0_6] : memref<2x4x4xf32, #tpu.memory_space<vmem>>, vector<1x4x4xf32>
    %4 = vector.shape_cast %3 : vector<1x4x4xf32> to vector<4x4xf32>
    %cst = arith.constant dense<0.000000e+00> : vector<64x4xf32>
    %5 = tpu.matmul %1, %4, %cst {dimension_numbers = #tpu.dot_dimension_numbers<[1], [0], [0], [1], [0, 0, 1, 1], [], []>} : vector<64x4xf32>, vector<4x4xf32>, vector<64x4xf32> -> vector<64x4xf32>
    %6 = vector.broadcast %2 : vector<1x4xf32> to vector<64x4xf32>
    %7 = arith.addf %5, %6 : vector<64x4xf32>
    %8 = vector.shape_cast %7 : vector<64x4xf32> to vector<4x16x4xf32>
    %c0_7 = arith.constant 0 : index
    %c0_8 = arith.constant 0 : index
    %c0_9 = arith.constant 0 : index
    %c0_10 = arith.constant 0 : index
    %c0_11 = arith.constant 0 : index
    %9 = vector.load %arg5[%c0_7, %c0_8, %c0_9, %c0_10, %c0_11] : memref<1x4x2x16x4xf32, #tpu.memory_space<vmem>>, vector<1x4x1x16x4xf32>
    %10 = vector.shape_cast %9 : vector<1x4x1x16x4xf32> to vector<4x16x4xf32>
    %11 = arith.addf %10, %8 : vector<4x16x4xf32>
    %c0_12 = arith.constant 0 : index
    %c0_13 = arith.constant 0 : index
    %c0_14 = arith.constant 0 : index
    %c0_15 = arith.constant 0 : index
    %c0_16 = arith.constant 0 : index
    %12 = vector.load %arg6[%c0_12, %c0_13, %c0_14, %c0_15, %c0_16] : memref<1x4x2x16x4xf32, #tpu.memory_space<vmem>>, vector<1x4x1x16x4xf32>
    %13 = vector.shape_cast %12 : vector<1x4x1x16x4xf32> to vector<4x16x4xf32>
    %14 = vector.shape_cast %11 : vector<4x16x4xf32> to vector<1x4x1x16x4xf32>
    tpu.vector_store %arg6[%c0_12, %c0_13, %c0_14, %c0_15, %c0_16], %14 {strides = array<i32>} : memref<1x4x2x16x4xf32, #tpu.memory_space<vmem>>, vector<1x4x1x16x4xf32>,
    %c1 = arith.constant 1 : index
    %c0_17 = arith.constant 0 : index
    %c0_18 = arith.constant 0 : index
    %15 = vector.load %arg3[%c1, %c0_17, %c0_18] : memref<2x4x4xf32, #tpu.memory_space<vmem>>, vector<1x4x4xf32>
    %16 = vector.shape_cast %15 : vector<1x4x4xf32> to vector<4x4xf32>
    %cst_19 = arith.constant dense<0.000000e+00> : vector<64x4xf32>
    %17 = tpu.matmul %1, %16, %cst_19 {dimension_numbers = #tpu.dot_dimension_numbers<[1], [0], [0], [1], [0, 0, 1, 1], [], []>} : vector<64x4xf32>, vector<4x4xf32>, vector<64x4xf32> -> vector<64x4xf32>
    %18 = vector.broadcast %2 : vector<1x4xf32> to vector<64x4xf32>
    %19 = arith.addf %17, %18 : vector<64x4xf32>
    %20 = vector.shape_cast %19 : vector<64x4xf32> to vector<4x16x4xf32>
    %c0_20 = arith.constant 0 : index
    %c0_21 = arith.constant 0 : index
    %c1_22 = arith.constant 1 : index
    %c0_23 = arith.constant 0 : index
    %c0_24 = arith.constant 0 : index
    %21 = vector.load %arg5[%c0_20, %c0_21, %c1_22, %c0_23, %c0_24] : memref<1x4x2x16x4xf32, #tpu.memory_space<vmem>>, vector<1x4x1x16x4xf32>
    %22 = vector.shape_cast %21 : vector<1x4x1x16x4xf32> to vector<4x16x4xf32>
    %23 = arith.addf %22, %20 : vector<4x16x4xf32>
    %c0_25 = arith.constant 0 : index
    %c0_26 = arith.constant 0 : index
    %c1_27 = arith.constant 1 : index
    %c0_28 = arith.constant 0 : index
    %c0_29 = arith.constant 0 : index
    %24 = vector.load %arg6[%c0_25, %c0_26, %c1_27, %c0_28, %c0_29] : memref<1x4x2x16x4xf32, #tpu.memory_space<vmem>>, vector<1x4x1x16x4xf32>
    %25 = vector.shape_cast %24 : vector<1x4x1x16x4xf32> to vector<4x16x4xf32>
    %26 = vector.shape_cast %23 : vector<4x16x4xf32> to vector<1x4x1x16x4xf32>
    tpu.vector_store %arg6[%c0_25, %c0_26, %c1_27, %c0_28, %c0_29], %26 {strides = array<i32>} : memref<1x4x2x16x4xf32, #tpu.memory_space<vmem>>, vector<1x4x1x16x4xf32>,
    return
  }
  func.func @transform_0(%arg0: i32, %arg1: i32) -> (i32, i32, i32) {
    %c0_i32 = arith.constant 0 : i32
    %c0_i32_0 = arith.constant 0 : i32
    return %arg0, %arg1, %c0_i32 : i32, i32, i32
  }
  func.func @transform_1(%arg0: i32, %arg1: i32) -> (i32, i32, i32) {
    %c0_i32 = arith.constant 0 : i32
    %c0_i32_0 = arith.constant 0 : i32
    %c0_i32_1 = arith.constant 0 : i32
    %c0_i32_2 = arith.constant 0 : i32
    return %c0_i32, %c0_i32_0, %c0_i32_1 : i32, i32, i32
  }
  func.func @transform_2(%arg0: i32, %arg1: i32) -> (i32, i32) {
    %c0_i32 = arith.constant 0 : i32
    %c0_i32_0 = arith.constant 0 : i32
    %c0_i32_1 = arith.constant 0 : i32
    return %c0_i32, %c0_i32_0 : i32, i32
  }
  func.func @transform_3(%arg0: i32, %arg1: i32) -> (i32, i32, i32, i32, i32) {
    %c0_i32 = arith.constant 0 : i32
    %c0_i32_0 = arith.constant 0 : i32
    %c0_i32_1 = arith.constant 0 : i32
    %c0_i32_2 = arith.constant 0 : i32
    return %arg0, %arg1, %c0_i32, %c0_i32_0, %c0_i32_1 : i32, i32, i32, i32, i32
  }
  func.func @transform_4(%arg0: i32, %arg1: i32) -> (i32, i32, i32, i32, i32) {
    %c0_i32 = arith.constant 0 : i32
    %c0_i32_0 = arith.constant 0 : i32
    %c0_i32_1 = arith.constant 0 : i32
    %c0_i32_2 = arith.constant 0 : i32
    return %arg0, %arg1, %c0_i32, %c0_i32_0, %c0_i32_1 : i32, i32, i32, i32, i32
  }
}

</mosaic_0001>

<bundles_post_ra>
// kernel: tile.8
= control target key start
LH: loop header
LB: loop body
LE: loop exit
PB: predicated region body
PF: predicated region fallthrough
CT: control target
= control target key end

     0   :  { %s22_s0 = inlined_call_operand.vmem [shape: f32[2], index: 0, kind: input, shape index: {}]   ;;  %s23_s1 = inlined_call_operand.vmem [shape: f32[2,2], index: 1, kind: output, shape index: {}]  }
   0x1   :  { %v4_v0 = vld [vmem:[%s22_s0] ss:$0 sm:$0xff] }
   0x2   :  { %5 = vst [vmem:[%s23_s1] sm:$0x3] %v4_v0 }

// kernel: tile.9
= control target key start
LH: loop header
LB: loop body
LE: loop exit
PB: predicated region body
PF: predicated region fallthrough
CT: control target
= control target key end

     0   :  { %vm7_vm0 = vcmask 15360   ;;  %vm13_vm1 = vcmask 31760   ;;  %s39_s0 = inlined_call_operand.vmem [shape: f32[2,2], index: 0, kind: input, shape index: {}]   ;;  %s40_s1 = inlined_call_operand.vmem [shape: f32[1,4], index: 1, kind: output, shape index: {}]  }
   0x1   :  { %v4_v0 = vld [vmem:[%s39_s0] sm:$0x3]  ;;  %s22_s0 = smov 2  }
   0x2   :  { %5 = vst [vmem:[#allocation1] sm:$0x3] %v4_v0 }
   0x9   :  { %v10_v1 = vld [vmem:[#allocation1 + $0x1] sm:$0x1]   ;;  %v6_v2 = vld [vmem:[#allocation1] sm:$0x1]  }
   0xa   :  { %11 = vrot.lane.b32.xlu0 %v10_v1, %s22_s0  ;;  %8 = vst.msk [vmem:[#allocation0] sm:$0x1] %vm7_vm0, %v6_v2  }
  0x7c   :  { %v12_v3 = vpop.permute.xlu0 %11  }
  0x7d   :  { %14 = vst.msk [vmem:[#allocation0] sm:$0x1] %vm13_vm1, %v12_v3  }
  0x84   :  { %v17_v4 = vld [vmem:[#allocation0] sm:$0x1] }
  0x85   :  { %20 = vst [vmem:[%s40_s1] sm:$0x1] %v17_v4 }

// kernel: up_forward.1
= control target key start
LH: loop header
LB: loop body
LE: loop exit
PB: predicated region body
PF: predicated region fallthrough
CT: control target
= control target key end

     0   :  { %s735_s15 = smov 0   ;;  %s737_s16 = smov 0   ;;  %s892_s0 = inlined_call_operand.vmem [shape: f32[2,256,4], index: 0, kind: input, shape index: {}]   ;;  %s893_s1 = inlined_call_operand.vmem [shape: f32[2,4,4], index: 1, kind: input, shape index: {}]   ;;  %s894_s2 = inlined_call_operand.vmem [shape: f32[1,4], index: 2, kind: input, shape index: {}]   ;;  %s895_s3 = inlined_call_operand.vmem [shape: f32[2,16,2,16,4], index: 3, kind: input, shape index: {}]   ;;  %s896_s4 = inlined_call_operand.vmem [shape: f32[2,16,2,16,4], index: 4, kind: output, shape index: {}]  }
   0x1   :  { %s739_s17 = smov 0   ;;  %s741_s18 = smov 0  }
   0x2   :  { %s743_s19 = smov 0  }
   0x3 LB: > { %s23_s20 = sadd.s32 1, %s700_s17  ;;  %s26_s21 = sadd.s32 1, %s704_s18  ;;  %s708_s19 = sphi %s743_s19, %s14_s19   ;;  %s704_s18 = sphi %s741_s18, %s900_s18   ;;  %s700_s17 = sphi %s739_s17, %s899_s17   ;;  %s696_s16 = sphi %s737_s16, %s898_s16   ;;  %s692_s15 = sphi %s735_s15, %s897_s15  }
   0x4   : > { %p24_p0 = scmp.ge.s32.totalorder %s23_s20, 4  ;;  %p578_p1 = scmp.ge.s32.totalorder %s708_s19, 1 }
   0x5   : > { %p201_p2 = scmp.lt.s32.totalorder %s708_s19, 9 }
   0x6   : > { %s902_s20 = smov (%p24_p0, %s23_s20), 0  ;;  %s904_s21 = smov (!%p24_p0, %s26_s21), %s704_s18 }
   0x7   : > { %p202_p3 = pnand %p578_p1, %p201_p2  ;;  %p28_p4 = scmp.ge.s32.totalorder %s904_s21, 2 }
   0x8   : > { %s579_s26 = sshll.u32 (!%p202_p3), %s692_s15, 3  ;;  %p247_p5 = scmp.lt.s32.totalorder (!%p202_p3), %s696_s16, 1 }
   0x9   : > { %s906_s21 = smov (%p28_p4, %s904_s21), 0  ;;  %205 = sbr.rel (%p202_p3) target bundleno = 182 (0xb6), region = 36 }
   0xa   : > { %p249_p6 = scmp.lt.s32.totalorder (!%p202_p3), %s579_s26, 31  ;;  %s582_s7 = sshll.u32 (!%p202_p3), %s692_s15, 2 }
   0xb   : > { %p259_p7 = scmp.lt.s32.totalorder (!%p202_p3), %s582_s7, 15 }
   0xe   : > { %v287_v0 = vld [vmem:[%s893_s1] sm:$0xf]  ;;  %vm316_vm0 = vcmask 1043456   ;;  %v599_v1 = vld [vmem:[%s893_s1 + $0x4] sm:$0xf]  ;;  %s908_s16 = smov (!%p247_p5, %s696_s16), 1 }
   0xf   : > { %627 = vmatpush.msk.msra.mxu2 %vm316_vm0, %v287_v0  ;;  %628 = vmatpush.msk.msra.mxu3 %vm316_vm0, %v599_v1  ;;  %s910_s26 = smov (!%p249_p6, %s579_s26), 31  ;;  %s580_s27 = sshll.u32 %s908_s16, 5  ;;  %vm291_vm1 = vcmask 31744   ;;  %v806_v10 = vld [vmem:[%s894_s2] ss:$0 sm:$0xff] }
  0x10   : > { %590 = vmatpush.msk.msra.mxu0 %vm316_vm0, %v287_v0  ;;  %600 = vmatpush.msk.msra.mxu1 %vm316_vm0, %v599_v1  ;;  %s252_s28 = sadd.s32 %s580_s27, %s910_s26  ;;  %s912_s7 = smov (!%p259_p7, %s582_s7), 15 }
  0x11   : > { %s581_s29 = sshll.u32 %s252_s28, 3  ;;  %s583_s8 = sshll.u32 %s912_s7, 2 }
  0x12   : > { %s254_s6 = scalar_lea.vmem %s892_s0, %s581_s29  ;;  %s584_s9 = sshll.u32 %s908_s16, 6 }
  0x13   : > { %v282_v2 = vld [vmem:[%s254_s6 + $0x20] sm:$0xff]  ;;  %v283_v4 = vld [vmem:[%s254_s6 + $0x28] sm:$0xff]  ;;  %v284_v6 = vld [vmem:[%s254_s6 + $0x30] sm:$0xff]  ;;  %s263_s10 = sadd.s32 %s584_s9, %s583_s8 }
  0x14   : > { %v278_v3 = vld [vmem:[%s254_s6] sm:$0xff]  ;;  %595 = vmatmul.msk.f32.vlgmr.msra.gmra.mxu2 %vm291_vm1, %v282_v2  ;;  %605 = vmatmul.msk.f32.vlgmr.msra.gmra.mxu3 %vm291_vm1, %v282_v2  ;;  %v279_v5 = vld [vmem:[%s254_s6 + $0x8] sm:$0xff]  ;;  %v280_v7 = vld [vmem:[%s254_s6 + $0x10] sm:$0xff]  ;;  %s585_s11 = sshll.u32 %s263_s10, 3 }
  0x15   : > { %591 = vmatmul.msk.f32.vlgmr.msra.gmra.mxu0 %vm291_vm1, %v278_v3  ;;  %601 = vmatmul.msk.f32.vlgmr.msra.gmra.mxu1 %vm291_vm1, %v278_v3  ;;  %v285_v8 = vld [vmem:[%s254_s6 + $0x38] sm:$0xff]  ;;  %s801_s14 = scalar_lea.vmem %s895_s3, %s585_s11  ;;  %s815_s24 = scalar_lea.vmem %s896_s4, %s585_s11 }
  0x16   : > { %v281_v9 = vld [vmem:[%s254_s6 + $0x18] sm:$0xff]  ;;  %v361_v12 = vld [vmem:[%s801_s14] sm:$0xff]  ;;  %v609_v14 = vld [vmem:[%s801_s14 + $0x10] sm:$0xff] }
  0x17   : > { %v365_v20 = vld [vmem:[%s801_s14 + $0x40] sm:$0xff]  ;;  %v613_v22 = vld [vmem:[%s801_s14 + $0x50] sm:$0xff]  ;;  %v362_v28 = vld [vmem:[%s801_s14 + $0x8] sm:$0xff] }
  0x18   : > { %v610_v30 = vld [vmem:[%s801_s14 + $0x18] sm:$0xff]  ;;  %v366_v36 = vld [vmem:[%s801_s14 + $0x48] sm:$0xff]  ;;  %v363_v44 = vld [vmem:[%s801_s14 + $0x20] sm:$0xff] }
  0x19   : > { %v614_v38 = vld [vmem:[%s801_s14 + $0x58] sm:$0xff]  ;;  %v611_v46 = vld [vmem:[%s801_s14 + $0x30] sm:$0xff]  ;;  %v367_v52 = vld [vmem:[%s801_s14 + $0x60] sm:$0xff] }
  0x1a   : > { %v615_v54 = vld [vmem:[%s801_s14 + $0x70] sm:$0xff]  ;;  %v364_v60 = vld [vmem:[%s801_s14 + $0x28] sm:$0xff]  ;;  %v612_v62 = vld [vmem:[%s801_s14 + $0x38] sm:$0xff] }
  0x1c   : > { %596 = vmatmul.msk.f32.gmra.mxu2 %vm291_vm1, %v283_v4  ;;  %606 = vmatmul.msk.f32.gmra.mxu3 %vm291_vm1, %v283_v4  ;;  %v368_v4 = vld [vmem:[%s801_s14 + $0x68] sm:$0xff] }
  0x1d   : > { %592 = vmatmul.msk.f32.gmra.mxu0 %vm291_vm1, %v279_v5  ;;  %602 = vmatmul.msk.f32.gmra.mxu1 %vm291_vm1, %v279_v5 }
  0x24   : > { %597 = vmatmul.msk.f32.gmra.mxu2 %vm291_vm1, %v284_v6  ;;  %607 = vmatmul.msk.f32.gmra.mxu3 %vm291_vm1, %v284_v6  ;;  %v616_v6 = vld [vmem:[%s801_s14 + $0x78] sm:$0xff] }
  0x25   : > { %593 = vmatmul.msk.f32.gmra.mxu0 %vm291_vm1, %v280_v7  ;;  %603 = vmatmul.msk.f32.gmra.mxu1 %vm291_vm1, %v280_v7 }
  0x2c   : > { %598 = vmatmul.msk.f32.gmra.mxu2 %vm291_vm1, %v285_v8  ;;  %608 = vmatmul.msk.f32.gmra.mxu3 %vm291_vm1, %v285_v8 }
  0x2d   : > { %594 = vmatmul.msk.f32.gmra.mxu0 %vm291_vm1, %v281_v9  ;;  %604 = vmatmul.msk.f32.gmra.mxu1 %vm291_vm1, %v281_v9 }
  0x92   : > { %v337_v11 = vpop.f32.mrf.mxu0  ;;  %v407_v13 = vpop.f32.mrf.mxu1 }
  0x93   : > { %v338_v15 = vadd.f32 %v806_v10, %v337_v11  ;;  %v408_v16 = vadd.f32 %v806_v10, %v407_v13 }
  0x95   : > { %v369_v17 = vadd.f32 %v361_v12, %v338_v15  ;;  %v440_v18 = vadd.f32 %v609_v14, %v408_v16 }
  0x97   : > { %377 = vst.msk [vmem:[%s815_s24] sm:$0xff] %vm291_vm1, %v369_v17  ;;  %v349_v19 = vpop.f32.mrf.mxu2  ;;  %v419_v21 = vpop.f32.mrf.mxu3 }
  0x98   : > { %v350_v23 = vadd.f32 %v806_v10, %v349_v19  ;;  %617 = vst.msk [vmem:[%s815_s24 + $0x10] sm:$0xff] %vm291_vm1, %v440_v18  ;;  %v420_v24 = vadd.f32 %v806_v10, %v419_v21 }
  0x9a   : > { %v373_v25 = vadd.f32 %v365_v20, %v350_v23  ;;  %v444_v26 = vadd.f32 %v613_v22, %v420_v24  ;;  %v340_v27 = vpop.f32.mrf.mxu0  ;;  %v410_v29 = vpop.f32.mrf.mxu1 }
  0x9b   : > { %v341_v31 = vadd.f32 %v806_v10, %v340_v27  ;;  %v411_v32 = vadd.f32 %v806_v10, %v410_v29 }
  0x9c   : > { %381 = vst.msk [vmem:[%s815_s24 + $0x40] sm:$0xff] %vm291_vm1, %v373_v25 }
  0x9d   : > { %621 = vst.msk [vmem:[%s815_s24 + $0x50] sm:$0xff] %vm291_vm1, %v444_v26  ;;  %v370_v33 = vadd.f32 %v362_v28, %v341_v31  ;;  %v441_v34 = vadd.f32 %v610_v30, %v411_v32 }
  0x9f   : > { %378 = vst.msk [vmem:[%s815_s24 + $0x8] sm:$0xff] %vm291_vm1, %v370_v33  ;;  %v352_v35 = vpop.f32.mrf.mxu2  ;;  %v422_v37 = vpop.f32.mrf.mxu3 }
  0xa0   : > { %v353_v39 = vadd.f32 %v806_v10, %v352_v35  ;;  %618 = vst.msk [vmem:[%s815_s24 + $0x18] sm:$0xff] %vm291_vm1, %v441_v34  ;;  %v423_v40 = vadd.f32 %v806_v10, %v422_v37 }
  0xa2   : > { %v374_v41 = vadd.f32 %v366_v36, %v353_v39  ;;  %v445_v42 = vadd.f32 %v614_v38, %v423_v40  ;;  %v343_v43 = vpop.f32.mrf.mxu0  ;;  %v413_v45 = vpop.f32.mrf.mxu1 }
  0xa3   : > { %v344_v47 = vadd.f32 %v806_v10, %v343_v43  ;;  %v414_v48 = vadd.f32 %v806_v10, %v413_v45 }
  0xa4   : > { %382 = vst.msk [vmem:[%s815_s24 + $0x48] sm:$0xff] %vm291_vm1, %v374_v41 }
  0xa5   : > { %622 = vst.msk [vmem:[%s815_s24 + $0x58] sm:$0xff] %vm291_vm1, %v445_v42  ;;  %v371_v49 = vadd.f32 %v363_v44, %v344_v47  ;;  %v442_v50 = vadd.f32 %v611_v46, %v414_v48 }
  0xa7   : > { %379 = vst.msk [vmem:[%s815_s24 + $0x20] sm:$0xff] %vm291_vm1, %v371_v49  ;;  %v355_v51 = vpop.f32.mrf.mxu2  ;;  %v425_v53 = vpop.f32.mrf.mxu3 }
  0xa8   : > { %v356_v55 = vadd.f32 %v806_v10, %v355_v51  ;;  %619 = vst.msk [vmem:[%s815_s24 + $0x30] sm:$0xff] %vm291_vm1, %v442_v50  ;;  %v426_v56 = vadd.f32 %v806_v10, %v425_v53 }
  0xaa   : > { %v375_v57 = vadd.f32 %v367_v52, %v356_v55  ;;  %v446_v58 = vadd.f32 %v615_v54, %v426_v56  ;;  %v346_v59 = vpop.f32.mrf.mxu0  ;;  %v416_v61 = vpop.f32.mrf.mxu1 }
  0xab   : > { %v347_v63 = vadd.f32 %v806_v10, %v346_v59  ;;  %v417_v0 = vadd.f32 %v806_v10, %v416_v61 }
  0xac   : > { %383 = vst.msk [vmem:[%s815_s24 + $0x60] sm:$0xff] %vm291_vm1, %v375_v57 }
  0xad   : > { %623 = vst.msk [vmem:[%s815_s24 + $0x70] sm:$0xff] %vm291_vm1, %v446_v58  ;;  %v372_v1 = vadd.f32 %v364_v60, %v347_v63  ;;  %v443_v2 = vadd.f32 %v612_v62, %v417_v0 }
  0xaf   : > { %380 = vst.msk [vmem:[%s815_s24 + $0x28] sm:$0xff] %vm291_vm1, %v372_v1  ;;  %v358_v3 = vpop.f32.mrf.mxu2  ;;  %v428_v5 = vpop.f32.mrf.mxu3 }
  0xb0   : > { %v359_v7 = vadd.f32 %v806_v10, %v358_v3  ;;  %620 = vst.msk [vmem:[%s815_s24 + $0x38] sm:$0xff] %vm291_vm1, %v443_v2  ;;  %v429_v8 = vadd.f32 %v806_v10, %v428_v5 }
  0xb2   : > { %v376_v9 = vadd.f32 %v368_v4, %v359_v7  ;;  %v447_v11 = vadd.f32 %v616_v6, %v429_v8 }
  0xb4   : > { %384 = vst.msk [vmem:[%s815_s24 + $0x68] sm:$0xff] %vm291_vm1, %v376_v9 }
  0xb5   : > { %624 = vst.msk [vmem:[%s815_s24 + $0x78] sm:$0xff] %vm291_vm1, %v447_v11 }
  0xb6 PF: > { %s14_s19 = sadd.s32 1, %s708_s19   ;;  %s897_s15 = smov %s700_s17 }
  0xb7   : > { %p11_p8 = scmp.ge.s32.totalorder %s14_s19, 10   ;;  %s898_s16 = smov %s704_s18 }
  0xb8   : > { %s899_s17 = smov %s902_s20  ;;  %s900_s18 = smov %s906_s21 }
  0xb9   :  { %13 = sbr.rel (!%p11_p8) target bundleno = 3 (0x3), region = 72 }

</bundles_post_ra>
